<compile_context>
chip_gen: v5e
topology: v5e:2x2
jax: 0.10.0
libtpu: 0.0.40
codegen_flags: <defaults>
</compile_context>

<pallas_src>
import jax
import jax.numpy as jnp
from jax.experimental import pallas as pl
from jax.experimental.pallas import tpu as pltpu

_MAX_TM = 1024  # target rows per grid step (f32 add hits ~85% roofline at 512-1024)


def _round_up(v, m):
    return (v + m - 1) // m * m


def _choose_tm(n):
    """Large row tiles, but always >= 2 grid steps so v7x's 2 TCs both get work."""
    if n <= 2 * _MAX_TM:
        return max(8, _round_up((n + 1) // 2, 8))
    return _MAX_TM


# -----------------------------------------------------------------------------
# Fused 4-layer MLP kernel: one (TM, fin) row-tile of x in, one (TM, ncls)
# row-tile of y out.  Weights/biases are small resident blocks in VMEM.
# Dropout(p) layers are identity in eval mode (self.training == False).
# -----------------------------------------------------------------------------
def _mlp_kernel(x_ref, w1_ref, b1_ref, w2_ref, b2_ref,
                w3_ref, b3_ref, w4_ref, b4_ref, o_ref):
    cdt = w1_ref.dtype  # bf16 operands for the MXU; accumulation stays f32
    h = x_ref[...].astype(cdt)
    h = jnp.maximum(
        jnp.dot(h, w1_ref[...], preferred_element_type=jnp.float32) + b1_ref[...],
        0.0).astype(cdt)
    h = jnp.maximum(
        jnp.dot(h, w2_ref[...], preferred_element_type=jnp.float32) + b2_ref[...],
        0.0).astype(cdt)
    h = jnp.maximum(
        jnp.dot(h, w3_ref[...], preferred_element_type=jnp.float32) + b3_ref[...],
        0.0).astype(cdt)
    out = jnp.dot(h, w4_ref[...], preferred_element_type=jnp.float32) + b4_ref[...]
    o_ref[...] = out.astype(o_ref.dtype)


@jax.jit
def mlp_forward(params, x):
    n, fin = x.shape
    hid = params["w1"].shape[1]
    ncls = params["w4"].shape[1]

    tm = _choose_tm(n)
    grid = (pl.cdiv(n, tm),)

    # bf16 MXU operands (weights are a few KiB -> negligible cast cost).
    # Biases stay f32: they are added to the f32 accumulator in the epilogue.
    w1 = params["w1"].astype(jnp.bfloat16)
    w2 = params["w2"].astype(jnp.bfloat16)
    w3 = params["w3"].astype(jnp.bfloat16)
    w4 = params["w4"].astype(jnp.bfloat16)
    b1 = params["b1"].reshape(1, hid)
    b2 = params["b2"].reshape(1, hid)
    b3 = params["b3"].reshape(1, hid)
    b4 = params["b4"].reshape(1, ncls)

    def resident(shape):
        # Same block index every grid step -> stays resident, no re-DMA.
        return pl.BlockSpec(shape, lambda i: (0, 0))

    out = pl.pallas_call(
        _mlp_kernel,
        out_shape=jax.ShapeDtypeStruct((n, ncls), jnp.float32),
        grid_spec=pltpu.PrefetchScalarGridSpec(
            num_scalar_prefetch=0,
            grid=grid,
            in_specs=[
                pl.BlockSpec((tm, fin), lambda i: (i, 0)),   # x row-tile (streamed)
                resident((fin, hid)), resident((1, hid)),    # W1, b1
                resident((hid, hid)), resident((1, hid)),    # W2, b2
                resident((hid, hid)), resident((1, hid)),    # W3, b3
                resident((hid, ncls)), resident((1, ncls)),  # W4, b4
            ],
            out_specs=pl.BlockSpec((tm, ncls), lambda i: (i, 0)),
        ),
        compiler_params=pltpu.CompilerParams(
            dimension_semantics=("parallel",)),
    )(x, w1, b1, w2, b2, w3, b3, w4, b4)

    return out


# -----------------------------------------------------------------------------
# Parameters (equivalent to nn.Linear: weight stored as (in, out), bias (out,)).
# -----------------------------------------------------------------------------
def init_params(key, num_in, num_hidden, num_classes):
    ks = jax.random.split(key, 8)

    def linear(kw, kb, fan_in, fan_out):
        lim = 1.0 / jnp.sqrt(float(fan_in))
        w = jax.random.uniform(kw, (fan_in, fan_out), jnp.float32, -lim, lim)
        b = jax.random.uniform(kb, (fan_out,), jnp.float32, -lim, lim)
        return w, b

    w1, b1 = linear(ks[0], ks[1], num_in, num_hidden)
    w2, b2 = linear(ks[2], ks[3], num_hidden, num_hidden)
    w3, b3 = linear(ks[4], ks[5], num_hidden, num_hidden)
    w4, b4 = linear(ks[6], ks[7], num_hidden, num_classes)
    return {"w1": w1, "b1": b1, "w2": w2, "b2": b2,
            "w3": w3, "b3": b3, "w4": w4, "b4": b4}


def mlp_reference(params, x):
    h = jnp.maximum(x @ params["w1"] + params["b1"], 0.0)
    h = jnp.maximum(h @ params["w2"] + params["b2"], 0.0)
    h = jnp.maximum(h @ params["w3"] + params["b3"], 0.0)
    return h @ params["w4"] + params["b4"]


if __name__ == "__main__":
    key = jax.random.PRNGKey(0)
    k_x, k_p = jax.random.split(key)

    num_nodes = 256
    num_in_features = 8
    num_hidden = 32
    num_classes = 4

    x = jax.random.normal(k_x, (num_nodes, num_in_features), jnp.float32)
    params = init_params(k_p, num_in_features, num_hidden, num_classes)

    out = mlp_forward(params, x)
    jax.block_until_ready(out)

    assert out.shape == (num_nodes, num_classes)

    ref = mlp_reference(params, x)
    # bf16 MXU operands with f32 accumulation -> a few 1e-3 absolute error max.
    assert jnp.allclose(out, ref, rtol=3e-2, atol=3e-2), (
        "pallas output mismatches reference")

    print("KERNEL_OK")
</pallas_src>

<mosaic_0001>
module attributes {stable_mosaic.version = 11 : i64} {
  func.func @_mlp_kernel(%arg0: i32, %arg1: memref<128x8xf32, #tpu.memory_space<vmem>>, %arg2: memref<8x32xbf16, #tpu.memory_space<vmem>>, %arg3: memref<1x32xf32, #tpu.memory_space<vmem>>, %arg4: memref<32x32xbf16, #tpu.memory_space<vmem>>, %arg5: memref<1x32xf32, #tpu.memory_space<vmem>>, %arg6: memref<32x32xbf16, #tpu.memory_space<vmem>>, %arg7: memref<1x32xf32, #tpu.memory_space<vmem>>, %arg8: memref<32x4xbf16, #tpu.memory_space<vmem>>, %arg9: memref<1x4xf32, #tpu.memory_space<vmem>>, %arg10: memref<128x4xf32, #tpu.memory_space<vmem>>) attributes {dimension_semantics = [#tpu.dimension_semantics<parallel>], iteration_bounds = array<i64: 2>, scalar_prefetch = 0 : i64, scratch_operands = 0 : i64, tpu.core_type = #tpu.core_type<tc>, window_params = [{transform_indices = @transform_0, window_bounds = array<i64: 128, 8>}, {pipeline_mode = #tpu.pipeline_mode<synchronous>, transform_indices = @transform_1, window_bounds = array<i64: 8, 32>}, {pipeline_mode = #tpu.pipeline_mode<synchronous>, transform_indices = @transform_2, window_bounds = array<i64: 1, 32>}, {pipeline_mode = #tpu.pipeline_mode<synchronous>, transform_indices = @transform_3, window_bounds = array<i64: 32, 32>}, {pipeline_mode = #tpu.pipeline_mode<synchronous>, transform_indices = @transform_4, window_bounds = array<i64: 1, 32>}, {pipeline_mode = #tpu.pipeline_mode<synchronous>, transform_indices = @transform_5, window_bounds = array<i64: 32, 32>}, {pipeline_mode = #tpu.pipeline_mode<synchronous>, transform_indices = @transform_6, window_bounds = array<i64: 1, 32>}, {pipeline_mode = #tpu.pipeline_mode<synchronous>, transform_indices = @transform_7, window_bounds = array<i64: 32, 4>}, {pipeline_mode = #tpu.pipeline_mode<synchronous>, transform_indices = @transform_8, window_bounds = array<i64: 1, 4>}, {transform_indices = @transform_9, window_bounds = array<i64: 128, 4>}]} {
    %c0 = arith.constant 0 : index
    %c0_0 = arith.constant 0 : index
    %0 = vector.load %arg1[%c0, %c0_0] : memref<128x8xf32, #tpu.memory_space<vmem>>, vector<128x8xf32>
    %1 = arith.truncf %0 : vector<128x8xf32> to vector<128x8xbf16>
    %c0_1 = arith.constant 0 : index
    %c0_2 = arith.constant 0 : index
    %2 = vector.load %arg2[%c0_1, %c0_2] : memref<8x32xbf16, #tpu.memory_space<vmem>>, vector<8x32xbf16>
    %cst = arith.constant dense<0.000000e+00> : vector<128x32xf32>
    %3 = tpu.matmul %1, %2, %cst {dimension_numbers = #tpu.dot_dimension_numbers<[1], [0], [0], [1], [0, 0, 1, 1], [], []>} : vector<128x8xbf16>, vector<8x32xbf16>, vector<128x32xf32> -> vector<128x32xf32>
    %c0_3 = arith.constant 0 : index
    %c0_4 = arith.constant 0 : index
    %4 = vector.load %arg3[%c0_3, %c0_4] : memref<1x32xf32, #tpu.memory_space<vmem>>, vector<1x32xf32>
    %5 = vector.broadcast %4 : vector<1x32xf32> to vector<128x32xf32>
    %6 = arith.addf %3, %5 : vector<128x32xf32>
    %cst_5 = arith.constant 0.000000e+00 : f32
    %7 = vector.broadcast %cst_5 : f32 to vector<128x32xf32>
    %8 = arith.maximumf %6, %7 : vector<128x32xf32>
    %9 = arith.truncf %8 : vector<128x32xf32> to vector<128x32xbf16>
    %c0_6 = arith.constant 0 : index
    %c0_7 = arith.constant 0 : index
    %10 = vector.load %arg4[%c0_6, %c0_7] : memref<32x32xbf16, #tpu.memory_space<vmem>>, vector<32x32xbf16>
    %cst_8 = arith.constant dense<0.000000e+00> : vector<128x32xf32>
    %11 = tpu.matmul %9, %10, %cst_8 {dimension_numbers = #tpu.dot_dimension_numbers<[1], [0], [0], [1], [0, 0, 1, 1], [], []>} : vector<128x32xbf16>, vector<32x32xbf16>, vector<128x32xf32> -> vector<128x32xf32>
    %c0_9 = arith.constant 0 : index
    %c0_10 = arith.constant 0 : index
    %12 = vector.load %arg5[%c0_9, %c0_10] : memref<1x32xf32, #tpu.memory_space<vmem>>, vector<1x32xf32>
    %13 = vector.broadcast %12 : vector<1x32xf32> to vector<128x32xf32>
    %14 = arith.addf %11, %13 : vector<128x32xf32>
    %cst_11 = arith.constant 0.000000e+00 : f32
    %15 = vector.broadcast %cst_11 : f32 to vector<128x32xf32>
    %16 = arith.maximumf %14, %15 : vector<128x32xf32>
    %17 = arith.truncf %16 : vector<128x32xf32> to vector<128x32xbf16>
    %c0_12 = arith.constant 0 : index
    %c0_13 = arith.constant 0 : index
    %18 = vector.load %arg6[%c0_12, %c0_13] : memref<32x32xbf16, #tpu.memory_space<vmem>>, vector<32x32xbf16>
    %cst_14 = arith.constant dense<0.000000e+00> : vector<128x32xf32>
    %19 = tpu.matmul %17, %18, %cst_14 {dimension_numbers = #tpu.dot_dimension_numbers<[1], [0], [0], [1], [0, 0, 1, 1], [], []>} : vector<128x32xbf16>, vector<32x32xbf16>, vector<128x32xf32> -> vector<128x32xf32>
    %c0_15 = arith.constant 0 : index
    %c0_16 = arith.constant 0 : index
    %20 = vector.load %arg7[%c0_15, %c0_16] : memref<1x32xf32, #tpu.memory_space<vmem>>, vector<1x32xf32>
    %21 = vector.broadcast %20 : vector<1x32xf32> to vector<128x32xf32>
    %22 = arith.addf %19, %21 : vector<128x32xf32>
    %cst_17 = arith.constant 0.000000e+00 : f32
    %23 = vector.broadcast %cst_17 : f32 to vector<128x32xf32>
    %24 = arith.maximumf %22, %23 : vector<128x32xf32>
    %25 = arith.truncf %24 : vector<128x32xf32> to vector<128x32xbf16>
    %c0_18 = arith.constant 0 : index
    %c0_19 = arith.constant 0 : index
    %26 = vector.load %arg8[%c0_18, %c0_19] : memref<32x4xbf16, #tpu.memory_space<vmem>>, vector<32x4xbf16>
    %cst_20 = arith.constant dense<0.000000e+00> : vector<128x4xf32>
    %27 = tpu.matmul %25, %26, %cst_20 {dimension_numbers = #tpu.dot_dimension_numbers<[1], [0], [0], [1], [0, 0, 1, 1], [], []>} : vector<128x32xbf16>, vector<32x4xbf16>, vector<128x4xf32> -> vector<128x4xf32>
    %c0_21 = arith.constant 0 : index
    %c0_22 = arith.constant 0 : index
    %28 = vector.load %arg9[%c0_21, %c0_22] : memref<1x4xf32, #tpu.memory_space<vmem>>, vector<1x4xf32>
    %29 = vector.broadcast %28 : vector<1x4xf32> to vector<128x4xf32>
    %30 = arith.addf %27, %29 : vector<128x4xf32>
    %c0_23 = arith.constant 0 : index
    %c0_24 = arith.constant 0 : index
    %31 = vector.load %arg10[%c0_23, %c0_24] : memref<128x4xf32, #tpu.memory_space<vmem>>, vector<128x4xf32>
    tpu.vector_store %arg10[%c0_23, %c0_24], %30 {strides = array<i32>} : memref<128x4xf32, #tpu.memory_space<vmem>>, vector<128x4xf32>,
    return
  }
  func.func @transform_0(%arg0: i32) -> (i32, i32) {
    %c0_i32 = arith.constant 0 : i32
    %c0_i32_0 = arith.constant 0 : i32
    return %arg0, %c0_i32 : i32, i32
  }
  func.func @transform_1(%arg0: i32) -> (i32, i32) {
    %c0_i32 = arith.constant 0 : i32
    %c0_i32_0 = arith.constant 0 : i32
    %c0_i32_1 = arith.constant 0 : i32
    return %c0_i32, %c0_i32_0 : i32, i32
  }
  func.func @transform_2(%arg0: i32) -> (i32, i32) {
    %c0_i32 = arith.constant 0 : i32
    %c0_i32_0 = arith.constant 0 : i32
    %c0_i32_1 = arith.constant 0 : i32
    return %c0_i32, %c0_i32_0 : i32, i32
  }
  func.func @transform_3(%arg0: i32) -> (i32, i32) {
    %c0_i32 = arith.constant 0 : i32
    %c0_i32_0 = arith.constant 0 : i32
    %c0_i32_1 = arith.constant 0 : i32
    return %c0_i32, %c0_i32_0 : i32, i32
  }
  func.func @transform_4(%arg0: i32) -> (i32, i32) {
    %c0_i32 = arith.constant 0 : i32
    %c0_i32_0 = arith.constant 0 : i32
    %c0_i32_1 = arith.constant 0 : i32
    return %c0_i32, %c0_i32_0 : i32, i32
  }
  func.func @transform_5(%arg0: i32) -> (i32, i32) {
    %c0_i32 = arith.constant 0 : i32
    %c0_i32_0 = arith.constant 0 : i32
    %c0_i32_1 = arith.constant 0 : i32
    return %c0_i32, %c0_i32_0 : i32, i32
  }
  func.func @transform_6(%arg0: i32) -> (i32, i32) {
    %c0_i32 = arith.constant 0 : i32
    %c0_i32_0 = arith.constant 0 : i32
    %c0_i32_1 = arith.constant 0 : i32
    return %c0_i32, %c0_i32_0 : i32, i32
  }
  func.func @transform_7(%arg0: i32) -> (i32, i32) {
    %c0_i32 = arith.constant 0 : i32
    %c0_i32_0 = arith.constant 0 : i32
    %c0_i32_1 = arith.constant 0 : i32
    return %c0_i32, %c0_i32_0 : i32, i32
  }
  func.func @transform_8(%arg0: i32) -> (i32, i32) {
    %c0_i32 = arith.constant 0 : i32
    %c0_i32_0 = arith.constant 0 : i32
    %c0_i32_1 = arith.constant 0 : i32
    return %c0_i32, %c0_i32_0 : i32, i32
  }
  func.func @transform_9(%arg0: i32) -> (i32, i32) {
    %c0_i32 = arith.constant 0 : i32
    %c0_i32_0 = arith.constant 0 : i32
    return %arg0, %c0_i32 : i32, i32
  }
}

</mosaic_0001>

<bundles_post_ra>
// kernel: mlp_forward.1
= control target key start
LH: loop header
LB: loop body
LE: loop exit
PB: predicated region body
PF: predicated region fallthrough
CT: control target
= control target key end

     0   :  { %s1012_s30 = smov 0   ;;  %s1171_s0 = inlined_call_operand.vmem [shape: f32[256,8], index: 0, kind: input, shape index: {}]   ;;  %s1172_s1 = inlined_call_operand.vmem [shape: bf16[8,32], index: 1, kind: input, shape index: {}]   ;;  %s1173_s2 = inlined_call_operand.vmem [shape: f32[1,32], index: 2, kind: input, shape index: {}]   ;;  %s1174_s3 = inlined_call_operand.vmem [shape: bf16[32,32], index: 3, kind: input, shape index: {}]   ;;  %s1175_s4 = inlined_call_operand.vmem [shape: f32[1,32], index: 4, kind: input, shape index: {}]   ;;  %s1176_s5 = inlined_call_operand.vmem [shape: bf16[32,32], index: 5, kind: input, shape index: {}]   ;;  %s1177_s6 = inlined_call_operand.vmem [shape: f32[1,32], index: 6, kind: input, shape index: {}]   ;;  %s1178_s7 = inlined_call_operand.vmem [shape: bf16[32,4], index: 7, kind: input, shape index: {}]   ;;  %s1179_s8 = inlined_call_operand.vmem [shape: f32[1,4], index: 8, kind: input, shape index: {}]   ;;  %s1180_s9 = inlined_call_operand.vmem [shape: f32[256,4], index: 9, kind: output, shape index: {}]  }
   0x1 LB: > { %s869_s10 = sadd.s32 4294967295, %s960_s30   ;;  %p873_p0 = scmp.ge.s32.totalorder %s960_s30, 1  ;;  %s960_s30 = sphi %s1012_s30, %s19_s30  }
   0x2   : > { %p288_p1 = scmp.lt.s32.totalorder %s960_s30, 3 }
   0x4   : > { %p289_p2 = pnand %p873_p0, %p288_p1 }
   0x5   : > { %s874_s13 = sshll.u32 (!%p289_p2), %s869_s10, 4 }
   0x6   : > { %292 = sbr.rel (%p289_p2) target bundleno = 698 (0x2ba), region = 56  ;;  %p325_p3 = scmp.lt.s32.totalorder (!%p289_p2), %s874_s13, 31 }
   0xb   : > { %v361_v0 = vld [vmem:[%s1172_s1] sm:$0xf]  ;;  %vm391_vm0 = vcmask 1043456   ;;  %s1182_s13 = smov (!%p325_p3, %s874_s13), 31  ;;  %vm366_vm1 = vcmask 64512   ;;  %v937_v23 = vld [vmem:[%s1174_s3 + $0x8] sm:$0xff] }
   0xc   : > { %v393_v1 = vsel %vm391_vm0, %v361_v0, 0  ;;  %s875_s14 = sshll.u32 %s1182_s13, 3  ;;  %519 = vmatpush.bf16.msra.mxu1 %v937_v23  ;;  %v936_v24 = vld [vmem:[%s1174_s3] sm:$0xff]  ;;  %vm488_vm2 = vcmask 261120   ;;  %vm796_vm3 = vcmask 31744  }
   0xd   : > { %402 = vmatpush.bf16.msra.mxu0 %v393_v1  ;;  %s1031_s17 = scalar_lea.vmem %s1171_s0, %s875_s14  ;;  %v1066_v29 = vld [vmem:[%s1173_s2] ss:$0 sm:$0xff]  ;;  %s1134_s22 = scalar_lea.vmem %s1180_s9, %s875_s14 }
   0xe   : > { %v337_v2 = vld [vmem:[%s1031_s17] sm:$0xff]  ;;  %v338_v3 = vld [vmem:[%s1031_s17 + $0x8] sm:$0xff]  ;;  %v339_v5 = vld [vmem:[%s1031_s17 + $0x10] sm:$0xff] }
   0xf   : > { %v353_v4 = vpack.c.bf16 %v338_v3, %v337_v2  ;;  %v340_v6 = vld [vmem:[%s1031_s17 + $0x18] sm:$0xff]  ;;  %v341_v8 = vld [vmem:[%s1031_s17 + $0x20] sm:$0xff]  ;;  %v342_v9 = vld [vmem:[%s1031_s17 + $0x28] sm:$0xff] }
  0x10   : > { %v354_v7 = vpack.c.bf16 %v340_v6, %v339_v5  ;;  %v355_v10 = vpack.c.bf16 %v342_v9, %v341_v8  ;;  %v343_v11 = vld [vmem:[%s1031_s17 + $0x30] sm:$0xff]  ;;  %v344_v12 = vld [vmem:[%s1031_s17 + $0x38] sm:$0xff]  ;;  %v345_v14 = vld [vmem:[%s1031_s17 + $0x40] sm:$0xff]  ;;  %520 = vmatpush.bf16.msra.mxu1 %v936_v24 }
  0x11   : > { %878 = vmatmul.msk.bf16.vlgmr.msra.gmra.mxu0 %vm366_vm1, %v353_v4  ;;  %v356_v13 = vpack.c.bf16 %v344_v12, %v343_v11  ;;  %v346_v15 = vld [vmem:[%s1031_s17 + $0x48] sm:$0xff]  ;;  %v347_v17 = vld [vmem:[%s1031_s17 + $0x50] sm:$0xff]  ;;  %v348_v18 = vld [vmem:[%s1031_s17 + $0x58] sm:$0xff] }
  0x12   : > { %v357_v16 = vpack.c.bf16 %v346_v15, %v345_v14  ;;  %v358_v19 = vpack.c.bf16 %v348_v18, %v347_v17  ;;  %v349_v20 = vld [vmem:[%s1031_s17 + $0x60] sm:$0xff]  ;;  %v350_v21 = vld [vmem:[%s1031_s17 + $0x68] sm:$0xff]  ;;  %v351_v25 = vld [vmem:[%s1031_s17 + $0x70] sm:$0xff] }
  0x13   : > { %v359_v22 = vpack.c.bf16 %v350_v21, %v349_v20  ;;  %v352_v26 = vld [vmem:[%s1031_s17 + $0x78] sm:$0xff]  ;;  %v939_v15 = vld [vmem:[%s1176_s5 + $0x8] sm:$0xff]  ;;  %v951_v24 = vld [vmem:[%s1175_s4] ss:$0 sm:$0xff] }
  0x14   : > { %v360_v27 = vpack.c.bf16 %v352_v26, %v351_v25  ;;  %636 = vmatpush.bf16.msra.mxu2 %v939_v15 }
  0x21   : > { %879 = vmatmul.msk.bf16.gmra.mxu0 %vm366_vm1, %v354_v7 }
  0x31   : > { %880 = vmatmul.msk.bf16.gmra.mxu0 %vm366_vm1, %v355_v10 }
  0x41   : > { %881 = vmatmul.msk.bf16.gmra.mxu0 %vm366_vm1, %v356_v13 }
  0x51   : > { %882 = vmatmul.msk.bf16.gmra.mxu0 %vm366_vm1, %v357_v16  ;;  %v938_v16 = vld [vmem:[%s1176_s5] sm:$0xff] }
  0x52   : > { %637 = vmatpush.bf16.msra.mxu2 %v938_v16  ;;  %v940_v16 = vld [vmem:[%s1178_s7] sm:$0xff] }
  0x61   : > { %883 = vmatmul.msk.bf16.gmra.mxu0 %vm366_vm1, %v358_v19 }
  0x71   : > { %884 = vmatmul.msk.bf16.gmra.mxu0 %vm366_vm1, %v359_v22 }
  0x81   : > { %885 = vmatmul.msk.bf16.gmra.mxu0 %vm366_vm1, %v360_v27 }
  0x8e   : > { %v404_v28 = vpop.f32.mrf.mxu0 }
  0x8f   : > { %v405_v30 = vadd.f32 %v1066_v29, %v404_v28 }
  0x91   : > { %v444_v33 = vmax.f32 %v405_v30, 0.0 }
  0x96   : > { %v406_v31 = vpop.f32.mrf.mxu0 }
  0x97   : > { %v407_v32 = vadd.f32 %v1066_v29, %v406_v31 }
  0x99   : > { %v445_v34 = vmax.f32 %v407_v32, 0.0 }
  0x9b   : > { %v460_v35 = vpack.c.bf16 %v445_v34, %v444_v33 }
  0x9d   : > { %894 = vmatmul.msk.bf16.vlgmr.msra.gmra.mxu1 %vm488_vm2, %v460_v35 }
  0x9e   : > { %v409_v36 = vpop.f32.mrf.mxu0 }
  0x9f   : > { %v410_v37 = vadd.f32 %v1066_v29, %v409_v36 }
  0xa1   : > { %v446_v40 = vmax.f32 %v410_v37, 0.0 }
  0xa6   : > { %v411_v38 = vpop.f32.mrf.mxu0 }
  0xa7   : > { %v412_v39 = vadd.f32 %v1066_v29, %v411_v38 }
  0xa9   : > { %v447_v41 = vmax.f32 %v412_v39, 0.0 }
  0xab   : > { %v461_v42 = vpack.c.bf16 %v447_v41, %v446_v40 }
  0xad   : > { %895 = vmatmul.msk.bf16.gmra.mxu1 %vm488_vm2, %v461_v42 }
  0xae   : > { %v414_v43 = vpop.f32.mrf.mxu0 }
  0xaf   : > { %v415_v44 = vadd.f32 %v1066_v29, %v414_v43 }
  0xb1   : > { %v448_v47 = vmax.f32 %v415_v44, 0.0 }
  0xb6   : > { %v416_v45 = vpop.f32.mrf.mxu0 }
  0xb7   : > { %v417_v46 = vadd.f32 %v1066_v29, %v416_v45 }
  0xb9   : > { %v449_v48 = vmax.f32 %v417_v46, 0.0 }
  0xbb   : > { %v462_v49 = vpack.c.bf16 %v449_v48, %v448_v47 }
  0xbd   : > { %896 = vmatmul.msk.bf16.gmra.mxu1 %vm488_vm2, %v462_v49 }
  0xbe   : > { %v419_v50 = vpop.f32.mrf.mxu0 }
  0xbf   : > { %v420_v51 = vadd.f32 %v1066_v29, %v419_v50 }
  0xc1   : > { %v450_v54 = vmax.f32 %v420_v51, 0.0 }
  0xc6   : > { %v421_v52 = vpop.f32.mrf.mxu0 }
  0xc7   : > { %v422_v53 = vadd.f32 %v1066_v29, %v421_v52 }
  0xc9   : > { %v451_v55 = vmax.f32 %v422_v53, 0.0 }
  0xcb   : > { %v463_v56 = vpack.c.bf16 %v451_v55, %v450_v54 }
  0xcd   : > { %897 = vmatmul.msk.bf16.gmra.mxu1 %vm488_vm2, %v463_v56 }
  0xce   : > { %v424_v57 = vpop.f32.mrf.mxu0 }
  0xcf   : > { %v425_v58 = vadd.f32 %v1066_v29, %v424_v57 }
  0xd1   : > { %v452_v61 = vmax.f32 %v425_v58, 0.0 }
  0xd6   : > { %v426_v59 = vpop.f32.mrf.mxu0 }
  0xd7   : > { %v427_v60 = vadd.f32 %v1066_v29, %v426_v59 }
  0xd9   : > { %v453_v62 = vmax.f32 %v427_v60, 0.0 }
  0xdb   : > { %v464_v63 = vpack.c.bf16 %v453_v62, %v452_v61 }
  0xdd   : > { %898 = vmatmul.msk.bf16.gmra.mxu1 %vm488_vm2, %v464_v63 }
  0xde   : > { %v429_v0 = vpop.f32.mrf.mxu0 }
  0xdf   : > { %v430_v1 = vadd.f32 %v1066_v29, %v429_v0 }
  0xe1   : > { %v454_v4 = vmax.f32 %v430_v1, 0.0 }
  0xe6   : > { %v431_v2 = vpop.f32.mrf.mxu0 }
  0xe7   : > { %v432_v3 = vadd.f32 %v1066_v29, %v431_v2 }
  0xe9   : > { %v455_v5 = vmax.f32 %v432_v3, 0.0 }
  0xeb   : > { %v465_v6 = vpack.c.bf16 %v455_v5, %v454_v4 }
  0xed   : > { %899 = vmatmul.msk.bf16.gmra.mxu1 %vm488_vm2, %v465_v6 }
  0xee   : > { %v434_v7 = vpop.f32.mrf.mxu0 }
  0xef   : > { %v435_v8 = vadd.f32 %v1066_v29, %v434_v7 }
  0xf1   : > { %v456_v11 = vmax.f32 %v435_v8, 0.0 }
  0xf6   : > { %v436_v9 = vpop.f32.mrf.mxu0 }
  0xf7   : > { %v437_v10 = vadd.f32 %v1066_v29, %v436_v9 }
  0xf9   : > { %v457_v12 = vmax.f32 %v437_v10, 0.0 }
  0xfb   : > { %v466_v13 = vpack.c.bf16 %v457_v12, %v456_v11  ;;  %v941_v12 = vld [vmem:[%s1178_s7 + $0x8] sm:$0xff] }
  0xfc   : > { %753 = vmatpush.bf16.msra.mxu3 %v941_v12 }
  0xfd   : > { %900 = vmatmul.msk.bf16.gmra.mxu1 %vm488_vm2, %v466_v13 }
  0xfe   : > { %v439_v14 = vpop.f32.mrf.mxu0 }
  0xff   : > { %v440_v17 = vadd.f32 %v1066_v29, %v439_v14 }
 0x100   : > { %754 = vmatpush.bf16.msra.mxu3 %v940_v16 }
 0x101   : > { %v458_v20 = vmax.f32 %v440_v17, 0.0 }
 0x106   : > { %v441_v18 = vpop.f32.mrf.mxu0 }
 0x107   : > { %v442_v19 = vadd.f32 %v1066_v29, %v441_v18 }
 0x109   : > { %v459_v21 = vmax.f32 %v442_v19, 0.0  ;;  %v952_v19 = vld [vmem:[%s1177_s6] ss:$0 sm:$0xff] }
 0x10b   : > { %v467_v22 = vpack.c.bf16 %v459_v21, %v458_v20 }
 0x10d   : > { %901 = vmatmul.msk.bf16.gmra.mxu1 %vm488_vm2, %v467_v22 }
 0x11a   : > { %v522_v23 = vpop.f32.mrf.mxu1 }
 0x11b   : > { %v523_v25 = vadd.f32 %v951_v24, %v522_v23 }
 0x11d   : > { %v562_v28 = vmax.f32 %v523_v25, 0.0 }
 0x122   : > { %v524_v26 = vpop.f32.mrf.mxu1 }
 0x123   : > { %v525_v27 = vadd.f32 %v951_v24, %v524_v26 }
 0x125   : > { %v563_v30 = vmax.f32 %v525_v27, 0.0 }
 0x127   : > { %v578_v31 = vpack.c.bf16 %v563_v30, %v562_v28 }
 0x129   : > { %910 = vmatmul.msk.bf16.vlgmr.msra.gmra.mxu2 %vm488_vm2, %v578_v31 }
 0x12a   : > { %v527_v32 = vpop.f32.mrf.mxu1 }
 0x12b   : > { %v528_v29 = vadd.f32 %v951_v24, %v527_v32 }
 0x12d   : > { %v564_v35 = vmax.f32 %v528_v29, 0.0 }
 0x132   : > { %v529_v33 = vpop.f32.mrf.mxu1 }
 0x133   : > { %v530_v34 = vadd.f32 %v951_v24, %v529_v33 }
 0x135   : > { %v565_v36 = vmax.f32 %v530_v34, 0.0 }
 0x137   : > { %v579_v37 = vpack.c.bf16 %v565_v36, %v564_v35 }
 0x139   : > { %911 = vmatmul.msk.bf16.gmra.mxu2 %vm488_vm2, %v579_v37 }
 0x13a   : > { %v532_v38 = vpop.f32.mrf.mxu1 }
 0x13b   : > { %v533_v39 = vadd.f32 %v951_v24, %v532_v38 }
 0x13d   : > { %v566_v42 = vmax.f32 %v533_v39, 0.0 }
 0x142   : > { %v534_v40 = vpop.f32.mrf.mxu1 }
 0x143   : > { %v535_v41 = vadd.f32 %v951_v24, %v534_v40 }
 0x145   : > { %v567_v43 = vmax.f32 %v535_v41, 0.0 }
 0x147   : > { %v580_v44 = vpack.c.bf16 %v567_v43, %v566_v42 }
 0x149   : > { %912 = vmatmul.msk.bf16.gmra.mxu2 %vm488_vm2, %v580_v44 }
 0x14a   : > { %v537_v45 = vpop.f32.mrf.mxu1 }
 0x14b   : > { %v538_v46 = vadd.f32 %v951_v24, %v537_v45 }
 0x14d   : > { %v568_v49 = vmax.f32 %v538_v46, 0.0 }
 0x152   : > { %v539_v47 = vpop.f32.mrf.mxu1 }
 0x153   : > { %v540_v48 = vadd.f32 %v951_v24, %v539_v47 }
 0x155   : > { %v569_v50 = vmax.f32 %v540_v48, 0.0 }
 0x157   : > { %v581_v51 = vpack.c.bf16 %v569_v50, %v568_v49 }
 0x159   : > { %913 = vmatmul.msk.bf16.gmra.mxu2 %vm488_vm2, %v581_v51 }
 0x15a   : > { %v542_v52 = vpop.f32.mrf.mxu1 }
 0x15b   : > { %v543_v53 = vadd.f32 %v951_v24, %v542_v52 }
 0x15d   : > { %v570_v56 = vmax.f32 %v543_v53, 0.0 }
 0x162   : > { %v544_v54 = vpop.f32.mrf.mxu1 }
 0x163   : > { %v545_v55 = vadd.f32 %v951_v24, %v544_v54 }
 0x165   : > { %v571_v57 = vmax.f32 %v545_v55, 0.0 }
 0x167   : > { %v582_v58 = vpack.c.bf16 %v571_v57, %v570_v56 }
 0x169   : > { %914 = vmatmul.msk.bf16.gmra.mxu2 %vm488_vm2, %v582_v58 }
 0x16a   : > { %v547_v59 = vpop.f32.mrf.mxu1 }
 0x16b   : > { %v548_v60 = vadd.f32 %v951_v24, %v547_v59 }
 0x16d   : > { %v572_v63 = vmax.f32 %v548_v60, 0.0 }
 0x172   : > { %v549_v61 = vpop.f32.mrf.mxu1 }
 0x173   : > { %v550_v62 = vadd.f32 %v951_v24, %v549_v61 }
 0x175   : > { %v573_v0 = vmax.f32 %v550_v62, 0.0 }
 0x177   : > { %v583_v1 = vpack.c.bf16 %v573_v0, %v572_v63 }
 0x179   : > { %915 = vmatmul.msk.bf16.gmra.mxu2 %vm488_vm2, %v583_v1 }
 0x17a   : > { %v552_v2 = vpop.f32.mrf.mxu1 }
 0x17b   : > { %v553_v3 = vadd.f32 %v951_v24, %v552_v2 }
 0x17d   : > { %v574_v6 = vmax.f32 %v553_v3, 0.0 }
 0x182   : > { %v554_v4 = vpop.f32.mrf.mxu1 }
 0x183   : > { %v555_v5 = vadd.f32 %v951_v24, %v554_v4 }
 0x185   : > { %v575_v7 = vmax.f32 %v555_v5, 0.0 }
 0x187   : > { %v584_v8 = vpack.c.bf16 %v575_v7, %v574_v6 }
 0x189   : > { %916 = vmatmul.msk.bf16.gmra.mxu2 %vm488_vm2, %v584_v8 }
 0x18a   : > { %v557_v9 = vpop.f32.mrf.mxu1 }
 0x18b   : > { %v558_v10 = vadd.f32 %v951_v24, %v557_v9 }
 0x18d   : > { %v576_v14 = vmax.f32 %v558_v10, 0.0 }
 0x192   : > { %v559_v11 = vpop.f32.mrf.mxu1 }
 0x193   : > { %v560_v13 = vadd.f32 %v951_v24, %v559_v11  ;;  %v953_v11 = vld [vmem:[%s1179_s8] ss:$0 sm:$0xff] }
 0x195   : > { %v577_v15 = vmax.f32 %v560_v13, 0.0 }
 0x197   : > { %v585_v17 = vpack.c.bf16 %v577_v15, %v576_v14 }
 0x199   : > { %917 = vmatmul.msk.bf16.gmra.mxu2 %vm488_vm2, %v585_v17 }
 0x1ac   : > { %v639_v18 = vpop.f32.mrf.mxu2 }
 0x1ad   : > { %v640_v20 = vadd.f32 %v952_v19, %v639_v18 }
 0x1af   : > { %v679_v23 = vmax.f32 %v640_v20, 0.0 }
 0x1b4   : > { %v641_v21 = vpop.f32.mrf.mxu2 }
 0x1b5   : > { %v642_v22 = vadd.f32 %v952_v19, %v641_v21 }
 0x1b7   : > { %v680_v24 = vmax.f32 %v642_v22, 0.0 }
 0x1b9   : > { %v695_v25 = vpack.c.bf16 %v680_v24, %v679_v23 }
 0x1bb   : > { %926 = vmatmul.msk.bf16.vlgmr.msra.gmra.mxu3 %vm488_vm2, %v695_v25 }
 0x1bc   : > { %v644_v26 = vpop.f32.mrf.mxu2 }
 0x1bd   : > { %v645_v27 = vadd.f32 %v952_v19, %v644_v26 }
 0x1bf   : > { %v681_v31 = vmax.f32 %v645_v27, 0.0 }
 0x1c4   : > { %v646_v28 = vpop.f32.mrf.mxu2 }
 0x1c5   : > { %v647_v30 = vadd.f32 %v952_v19, %v646_v28 }
 0x1c7   : > { %v682_v32 = vmax.f32 %v647_v30, 0.0 }
 0x1c9   : > { %v696_v29 = vpack.c.bf16 %v682_v32, %v681_v31 }
 0x1cb   : > { %927 = vmatmul.msk.bf16.gmra.mxu3 %vm488_vm2, %v696_v29 }
 0x1cc   : > { %v649_v33 = vpop.f32.mrf.mxu2 }
 0x1cd   : > { %v650_v34 = vadd.f32 %v952_v19, %v649_v33 }
 0x1cf   : > { %v683_v37 = vmax.f32 %v650_v34, 0.0 }
 0x1d4   : > { %v651_v35 = vpop.f32.mrf.mxu2 }
 0x1d5   : > { %v652_v36 = vadd.f32 %v952_v19, %v651_v35 }
 0x1d7   : > { %v684_v38 = vmax.f32 %v652_v36, 0.0 }
 0x1d9   : > { %v697_v39 = vpack.c.bf16 %v684_v38, %v683_v37 }
 0x1db   : > { %928 = vmatmul.msk.bf16.gmra.mxu3 %vm488_vm2, %v697_v39 }
 0x1dc   : > { %v654_v40 = vpop.f32.mrf.mxu2 }
 0x1dd   : > { %v655_v41 = vadd.f32 %v952_v19, %v654_v40 }
 0x1df   : > { %v685_v44 = vmax.f32 %v655_v41, 0.0 }
 0x1e4   : > { %v656_v42 = vpop.f32.mrf.mxu2 }
 0x1e5   : > { %v657_v43 = vadd.f32 %v952_v19, %v656_v42 }
 0x1e7   : > { %v686_v45 = vmax.f32 %v657_v43, 0.0 }
 0x1e9   : > { %v698_v46 = vpack.c.bf16 %v686_v45, %v685_v44 }
 0x1eb   : > { %929 = vmatmul.msk.bf16.gmra.mxu3 %vm488_vm2, %v698_v46 }
 0x1ec   : > { %v659_v47 = vpop.f32.mrf.mxu2 }
 0x1ed   : > { %v660_v48 = vadd.f32 %v952_v19, %v659_v47 }
 0x1ef   : > { %v687_v51 = vmax.f32 %v660_v48, 0.0 }
 0x1f4   : > { %v661_v49 = vpop.f32.mrf.mxu2 }
 0x1f5   : > { %v662_v50 = vadd.f32 %v952_v19, %v661_v49 }
 0x1f7   : > { %v688_v52 = vmax.f32 %v662_v50, 0.0 }
 0x1f9   : > { %v699_v53 = vpack.c.bf16 %v688_v52, %v687_v51 }
 0x1fb   : > { %930 = vmatmul.msk.bf16.gmra.mxu3 %vm488_vm2, %v699_v53 }
 0x1fc   : > { %v664_v54 = vpop.f32.mrf.mxu2 }
 0x1fd   : > { %v665_v55 = vadd.f32 %v952_v19, %v664_v54 }
 0x1ff   : > { %v689_v58 = vmax.f32 %v665_v55, 0.0 }
 0x204   : > { %v666_v56 = vpop.f32.mrf.mxu2 }
 0x205   : > { %v667_v57 = vadd.f32 %v952_v19, %v666_v56 }
 0x207   : > { %v690_v59 = vmax.f32 %v667_v57, 0.0 }
 0x209   : > { %v700_v60 = vpack.c.bf16 %v690_v59, %v689_v58 }
 0x20b   : > { %931 = vmatmul.msk.bf16.gmra.mxu3 %vm488_vm2, %v700_v60 }
 0x20c   : > { %v669_v61 = vpop.f32.mrf.mxu2 }
 0x20d   : > { %v670_v62 = vadd.f32 %v952_v19, %v669_v61 }
 0x20f   : > { %v691_v1 = vmax.f32 %v670_v62, 0.0 }
 0x214   : > { %v671_v63 = vpop.f32.mrf.mxu2 }
 0x215   : > { %v672_v0 = vadd.f32 %v952_v19, %v671_v63 }
 0x217   : > { %v692_v2 = vmax.f32 %v672_v0, 0.0 }
 0x219   : > { %v701_v3 = vpack.c.bf16 %v692_v2, %v691_v1 }
 0x21b   : > { %932 = vmatmul.msk.bf16.gmra.mxu3 %vm488_vm2, %v701_v3 }
 0x21c   : > { %v674_v4 = vpop.f32.mrf.mxu2 }
 0x21d   : > { %v675_v5 = vadd.f32 %v952_v19, %v674_v4 }
 0x21f   : > { %v693_v8 = vmax.f32 %v675_v5, 0.0 }
 0x224   : > { %v676_v6 = vpop.f32.mrf.mxu2 }
 0x225   : > { %v677_v7 = vadd.f32 %v952_v19, %v676_v6 }
 0x227   : > { %v694_v9 = vmax.f32 %v677_v7, 0.0 }
 0x229   : > { %v702_v10 = vpack.c.bf16 %v694_v9, %v693_v8 }
 0x22b   : > { %933 = vmatmul.msk.bf16.gmra.mxu3 %vm488_vm2, %v702_v10 }
 0x23e   : > { %v756_v12 = vpop.f32.mrf.mxu3 }
 0x23f   : > { %v757_v13 = vadd.f32 %v953_v11, %v756_v12 }
 0x241   : > { %797 = vst.msk [vmem:[%s1134_s22] sm:$0xff] %vm796_vm3, %v757_v13 }
 0x246   : > { %v758_v14 = vpop.f32.mrf.mxu3 }
 0x247   : > { %v759_v15 = vadd.f32 %v953_v11, %v758_v14 }
 0x249   : > { %798 = vst.msk [vmem:[%s1134_s22 + $0x8] sm:$0xff] %vm796_vm3, %v759_v15 }
 0x24e   : > { %v761_v16 = vpop.f32.mrf.mxu3 }
 0x24f   : > { %v762_v17 = vadd.f32 %v953_v11, %v761_v16 }
 0x251   : > { %799 = vst.msk [vmem:[%s1134_s22 + $0x10] sm:$0xff] %vm796_vm3, %v762_v17 }
 0x256   : > { %v763_v18 = vpop.f32.mrf.mxu3 }
 0x257   : > { %v764_v19 = vadd.f32 %v953_v11, %v763_v18 }
 0x259   : > { %800 = vst.msk [vmem:[%s1134_s22 + $0x18] sm:$0xff] %vm796_vm3, %v764_v19 }
 0x25e   : > { %v766_v20 = vpop.f32.mrf.mxu3 }
 0x25f   : > { %v767_v21 = vadd.f32 %v953_v11, %v766_v20 }
 0x261   : > { %801 = vst.msk [vmem:[%s1134_s22 + $0x20] sm:$0xff] %vm796_vm3, %v767_v21 }
 0x266   : > { %v768_v22 = vpop.f32.mrf.mxu3 }
 0x267   : > { %v769_v23 = vadd.f32 %v953_v11, %v768_v22 }
 0x269   : > { %802 = vst.msk [vmem:[%s1134_s22 + $0x28] sm:$0xff] %vm796_vm3, %v769_v23 }
 0x26e   : > { %v771_v24 = vpop.f32.mrf.mxu3 }
 0x26f   : > { %v772_v25 = vadd.f32 %v953_v11, %v771_v24 }
 0x271   : > { %803 = vst.msk [vmem:[%s1134_s22 + $0x30] sm:$0xff] %vm796_vm3, %v772_v25 }
 0x276   : > { %v773_v26 = vpop.f32.mrf.mxu3 }
 0x277   : > { %v774_v27 = vadd.f32 %v953_v11, %v773_v26 }
 0x279   : > { %804 = vst.msk [vmem:[%s1134_s22 + $0x38] sm:$0xff] %vm796_vm3, %v774_v27 }
 0x27e   : > { %v776_v28 = vpop.f32.mrf.mxu3 }
 0x27f   : > { %v777_v30 = vadd.f32 %v953_v11, %v776_v28 }
 0x281   : > { %805 = vst.msk [vmem:[%s1134_s22 + $0x40] sm:$0xff] %vm796_vm3, %v777_v30 }
 0x286   : > { %v778_v31 = vpop.f32.mrf.mxu3 }
 0x287   : > { %v779_v32 = vadd.f32 %v953_v11, %v778_v31 }
 0x289   : > { %806 = vst.msk [vmem:[%s1134_s22 + $0x48] sm:$0xff] %vm796_vm3, %v779_v32 }
 0x28e   : > { %v781_v29 = vpop.f32.mrf.mxu3 }
 0x28f   : > { %v782_v33 = vadd.f32 %v953_v11, %v781_v29 }
 0x291   : > { %807 = vst.msk [vmem:[%s1134_s22 + $0x50] sm:$0xff] %vm796_vm3, %v782_v33 }
 0x296   : > { %v783_v34 = vpop.f32.mrf.mxu3 }
 0x297   : > { %v784_v35 = vadd.f32 %v953_v11, %v783_v34 }
 0x299   : > { %808 = vst.msk [vmem:[%s1134_s22 + $0x58] sm:$0xff] %vm796_vm3, %v784_v35 }
 0x29e   : > { %v786_v36 = vpop.f32.mrf.mxu3 }
 0x29f   : > { %v787_v37 = vadd.f32 %v953_v11, %v786_v36 }
 0x2a1   : > { %809 = vst.msk [vmem:[%s1134_s22 + $0x60] sm:$0xff] %vm796_vm3, %v787_v37 }
 0x2a6   : > { %v788_v38 = vpop.f32.mrf.mxu3 }
 0x2a7   : > { %v789_v39 = vadd.f32 %v953_v11, %v788_v38 }
 0x2a9   : > { %810 = vst.msk [vmem:[%s1134_s22 + $0x68] sm:$0xff] %vm796_vm3, %v789_v39 }
 0x2ae   : > { %v791_v40 = vpop.f32.mrf.mxu3 }
 0x2af   : > { %v792_v41 = vadd.f32 %v953_v11, %v791_v40 }
 0x2b1   : > { %811 = vst.msk [vmem:[%s1134_s22 + $0x70] sm:$0xff] %vm796_vm3, %v792_v41 }
 0x2b6   : > { %v793_v42 = vpop.f32.mrf.mxu3 }
 0x2b7   : > { %v794_v43 = vadd.f32 %v953_v11, %v793_v42 }
 0x2b9   : > { %812 = vst.msk [vmem:[%s1134_s22 + $0x78] sm:$0xff] %vm796_vm3, %v794_v43 }
 0x2ba PF: > { %s19_s30 = sadd.s32 1, %s960_s30  }
 0x2bb   : > { %p16_p4 = scmp.ge.s32.totalorder %s19_s30, 4  }
 0x2bd   :  { %18 = sbr.rel (!%p16_p4) target bundleno = 1 (0x1), region = 86 }

</bundles_post_ra>
